<compile_context>
chip_gen: v7x
topology: tpu7x:2x2x1
jax: 0.10.0
libtpu: 0.0.40
codegen_flags: <defaults>
</compile_context>

<pallas_src>
import jax
import jax.numpy as jnp
from jax.experimental import pallas as pl
from jax.experimental.pallas import tpu as pltpu


def _make_noisy_linear_kernel(mxu_dtype, use_scratch):
    """Kernel factory.  use_scratch=True adds a separate f32 accumulator (only
    needed when the output dtype is not f32)."""

    def kernel(x_ref, wmu_ref, wsig_ref, weps_ref, bmu_ref, bsig_ref, beps_ref,
               o_ref, *scratch):
        acc_ref = scratch[0] if use_scratch else o_ref

        k = pl.program_id(2)           # reduction tile (in_features)
        nk = pl.num_programs(2)

        @pl.when(k == 0)
        def _init():
            acc_ref[...] = jnp.zeros_like(acc_ref)

        # Noisy weight tile, constructed in f32 (v5e has no bf16 VPU): [tn, tk]
        w = wmu_ref[...] + wsig_ref[...] * weps_ref[...]

        # x:[tm, tk] (.) w:[tn, tk] contracted over the LAST dims of both ->
        # [tm, tn]; no materialized w.T.  Operands are cast to the MXU dtype
        # right before the dot, accumulation stays f32.
        acc_ref[...] += jax.lax.dot_general(
            x_ref[...].astype(mxu_dtype), w.astype(mxu_dtype),
            dimension_numbers=(((1,), (1,)), ((), ())),
            preferred_element_type=jnp.float32)

        @pl.when(k == nk - 1)
        def _finalize():
            b = bmu_ref[...] + bsig_ref[...] * beps_ref[...]     # [1, tn]
            o_ref[...] = (acc_ref[...] + b).astype(o_ref.dtype)

    return kernel


def _pick_tile(dim, preferred):
    """Largest clean tile: `preferred` if it divides `dim`, else the full dim."""
    return preferred if dim % preferred == 0 else dim


def noisy_linear(x, weight_mu, weight_sigma, bias_mu, bias_sigma, key, *,
                 block_m=None, block_n=512, block_k=512,
                 mxu_dtype=jnp.bfloat16, return_noise=False):
    """Fused NoisyLinear forward.  `key` refreshes the epsilon buffers (the
    equivalent of .normal_() each call)."""
    B, in_features = x.shape
    out_features, in_features_w = weight_mu.shape
    assert in_features_w == in_features

    # Fresh i.i.d. N(0,1) noise per forward, as in the PyTorch module.
    k_w, k_b = jax.random.split(key)
    weight_eps = jax.random.normal(k_w, (out_features, in_features),
                                   dtype=jnp.float32)
    bias_eps = jax.random.normal(k_b, (out_features,), dtype=jnp.float32)

    # Whole batch in one tile whenever it fits (nb == 1) -> each noisy-weight
    # tile is built exactly once per forward.
    if block_m is None:
        block_m = min(B, 512)
    tm = _pick_tile(B, block_m)
    tn = _pick_tile(out_features, block_n)
    tk = _pick_tile(in_features, block_k)
    nb, nj, nk = B // tm, out_features // tn, in_features // tk

    out_dtype = x.dtype
    use_scratch = out_dtype != jnp.float32

    # Biases carried as [1, out] so they are 2-D (lane-major) tiles in VMEM.
    bmu2 = bias_mu.reshape(1, out_features).astype(jnp.float32)
    bsig2 = bias_sigma.reshape(1, out_features).astype(jnp.float32)
    beps2 = bias_eps.reshape(1, out_features)

    # Grid: out-feature tiles first (leading parallel axis -> megacore splits
    # weight traffic), batch tiles second, reduction last ("arbitrary").
    grid = (nj, nb, nk)

    in_specs = [
        pl.BlockSpec((tm, tk), lambda j, i, k: (i, k)),   # x
        pl.BlockSpec((tn, tk), lambda j, i, k: (j, k)),   # weight_mu
        pl.BlockSpec((tn, tk), lambda j, i, k: (j, k)),   # weight_sigma
        pl.BlockSpec((tn, tk), lambda j, i, k: (j, k)),   # weight_epsilon
        pl.BlockSpec((1, tn), lambda j, i, k: (0, j)),    # bias_mu
        pl.BlockSpec((1, tn), lambda j, i, k: (0, j)),    # bias_sigma
        pl.BlockSpec((1, tn), lambda j, i, k: (0, j)),    # bias_epsilon
    ]
    out_specs = pl.BlockSpec((tm, tn), lambda j, i, k: (i, j))

    scratch_shapes = [pltpu.VMEM((tm, tn), jnp.float32)] if use_scratch else []

    # Per-call VMEM cap: double-buffered tile footprint with 2x headroom,
    # clamped to [32 MiB, 48 MiB] (v7x physical VMEM is 64 MiB, v5e/v6e 128 MiB).
    fp32 = 4
    tile_bytes = (tm * tk + 3 * tn * tk + 3 * tn + tm * tn) * fp32
    footprint = 2 * tile_bytes + (tm * tn * fp32 if use_scratch else 0)
    vmem_limit = int(min(max(2 * footprint, 32 << 20), 48 << 20))

    grid_spec = pltpu.PrefetchScalarGridSpec(
        num_scalar_prefetch=0,
        grid=grid,
        in_specs=in_specs,
        out_specs=out_specs,
        scratch_shapes=scratch_shapes,
    )

    # TODO(synk): if xprof shows exposed weight DMA after these changes, set
    # pipeline_mode=pl.Buffered(3) on the three weight-stream BlockSpecs.
    out = pl.pallas_call(
        _make_noisy_linear_kernel(mxu_dtype, use_scratch),
        out_shape=jax.ShapeDtypeStruct((B, out_features), out_dtype),
        grid_spec=grid_spec,
        compiler_params=pltpu.CompilerParams(
            dimension_semantics=("parallel", "parallel", "arbitrary"),
            vmem_limit_bytes=vmem_limit,
        ),
    )(x, weight_mu, weight_sigma, weight_eps, bmu2, bsig2, beps2)

    if return_noise:
        return out, weight_eps, bias_eps
    return out


def init_noisy_linear_params(key, in_features, out_features, sigma=0.1,
                             dtype=jnp.float32):
    """Re-implementation of NoisyLinear.reset_parameters()."""
    k_wmu, k_bmu = jax.random.split(key)
    mu_range = 1.0 / (in_features ** 0.5)
    weight_mu = jax.random.uniform(k_wmu, (out_features, in_features),
                                   minval=-mu_range, maxval=mu_range, dtype=dtype)
    weight_sigma = jnp.full((out_features, in_features),
                            sigma / (in_features ** 0.5), dtype=dtype)
    bias_mu = jax.random.uniform(k_bmu, (out_features,),
                                 minval=-mu_range, maxval=mu_range, dtype=dtype)
    bias_sigma = jnp.full((out_features,), sigma / (out_features ** 0.5),
                          dtype=dtype)
    return weight_mu, weight_sigma, bias_mu, bias_sigma


if __name__ == "__main__":
    batch = 8            # multiple of 8 (sublanes)
    in_features = 256    # multiples of 128 (lanes)
    out_features = 128
    sigma = 0.1

    key = jax.random.PRNGKey(0)
    k_param, k_x, k_noise = jax.random.split(key, 3)

    weight_mu, weight_sigma, bias_mu, bias_sigma = init_noisy_linear_params(
        k_param, in_features, out_features, sigma)
    x = jax.random.normal(k_x, (batch, in_features), dtype=jnp.float32)

    # 1) Default path: whole-batch tile, bf16 MXU operands, f32 accumulation.
    out, weps, beps = noisy_linear(
        x, weight_mu, weight_sigma, bias_mu, bias_sigma, k_noise,
        return_noise=True)
    out = jax.block_until_ready(out)
    assert out.shape == (batch, out_features)
    assert bool(jnp.all(jnp.isfinite(out)))

    # Pure-JAX reference using the same epsilon and the same bf16 operand cast.
    w_ref = weight_mu + weight_sigma * weps
    b_ref = bias_mu + bias_sigma * beps
    ref_bf16 = jnp.dot(
        x.astype(jnp.bfloat16).astype(jnp.float32),
        w_ref.T.astype(jnp.bfloat16).astype(jnp.float32),
        precision=jax.lax.Precision.HIGHEST) + b_ref
    err = float(jnp.max(jnp.abs(out - ref_bf16)))
    assert err < 2e-2, f"bf16 path max abs err = {err}"

    # 2) Exact-f32 path with small tiles to exercise the k-reduction pipeline.
    out_f32 = noisy_linear(
        x, weight_mu, weight_sigma, bias_mu, bias_sigma, k_noise,
        block_n=128, block_k=128, mxu_dtype=jnp.float32)
    out_f32 = jax.block_until_ready(out_f32)
    ref_f32 = jnp.dot(x, w_ref.T, precision=jax.lax.Precision.HIGHEST) + b_ref
    err32 = float(jnp.max(jnp.abs(out_f32 - ref_f32)))
    assert err32 < 2e-3, f"f32 path max abs err = {err32}"

    print("KERNEL_OK")
</pallas_src>

<mosaic_0001>
module attributes {stable_mosaic.version = 11 : i64} {
  func.func @kernel(%arg0: i32, %arg1: i32, %arg2: i32, %arg3: memref<8x256xf32, #tpu.memory_space<vmem>>, %arg4: memref<128x256xf32, #tpu.memory_space<vmem>>, %arg5: memref<128x256xf32, #tpu.memory_space<vmem>>, %arg6: memref<128x256xf32, #tpu.memory_space<vmem>>, %arg7: memref<1x128xf32, #tpu.memory_space<vmem>>, %arg8: memref<1x128xf32, #tpu.memory_space<vmem>>, %arg9: memref<1x128xf32, #tpu.memory_space<vmem>>, %arg10: memref<8x128xf32, #tpu.memory_space<vmem>>) attributes {dimension_semantics = [#tpu.dimension_semantics<parallel>, #tpu.dimension_semantics<parallel>, #tpu.dimension_semantics<arbitrary>], iteration_bounds = array<i64: 1, 1, 1>, scalar_prefetch = 0 : i64, scratch_operands = 0 : i64, tpu.core_type = #tpu.core_type<tc>, window_params = [{transform_indices = @transform_0, window_bounds = array<i64: 8, 256>}, {transform_indices = @transform_1, window_bounds = array<i64: 128, 256>}, {transform_indices = @transform_2, window_bounds = array<i64: 128, 256>}, {transform_indices = @transform_3, window_bounds = array<i64: 128, 256>}, {transform_indices = @transform_4, window_bounds = array<i64: 1, 128>}, {transform_indices = @transform_5, window_bounds = array<i64: 1, 128>}, {transform_indices = @transform_6, window_bounds = array<i64: 1, 128>}, {transform_indices = @transform_7, window_bounds = array<i64: 8, 128>}]} {
    %c0_i32 = arith.constant 0 : i32
    %0 = arith.cmpi eq, %arg2, %c0_i32 : i32
    %1 = arith.extui %0 : i1 to i32
    %c0_i32_0 = arith.constant 0 : i32
    %2 = arith.cmpi ne, %1, %c0_i32_0 : i32
    scf.if %2 {
      %cst_14 = arith.constant 0.000000e+00 : f32
      %18 = vector.broadcast %cst_14 : f32 to vector<8x128xf32>
      %c0_15 = arith.constant 0 : index
      %c0_16 = arith.constant 0 : index
      %19 = vector.load %arg10[%c0_15, %c0_16] : memref<8x128xf32, #tpu.memory_space<vmem>>, vector<8x128xf32>
      tpu.vector_store %arg10[%c0_15, %c0_16], %18 {strides = array<i32>} : memref<8x128xf32, #tpu.memory_space<vmem>>, vector<8x128xf32>,
    } else {
    }
    %c0 = arith.constant 0 : index
    %c0_1 = arith.constant 0 : index
    %3 = vector.load %arg4[%c0, %c0_1] : memref<128x256xf32, #tpu.memory_space<vmem>>, vector<128x256xf32>
    %c0_2 = arith.constant 0 : index
    %c0_3 = arith.constant 0 : index
    %4 = vector.load %arg5[%c0_2, %c0_3] : memref<128x256xf32, #tpu.memory_space<vmem>>, vector<128x256xf32>
    %c0_4 = arith.constant 0 : index
    %c0_5 = arith.constant 0 : index
    %5 = vector.load %arg6[%c0_4, %c0_5] : memref<128x256xf32, #tpu.memory_space<vmem>>, vector<128x256xf32>
    %6 = arith.mulf %4, %5 : vector<128x256xf32>
    %7 = arith.addf %3, %6 : vector<128x256xf32>
    %c0_6 = arith.constant 0 : index
    %c0_7 = arith.constant 0 : index
    %8 = vector.load %arg10[%c0_6, %c0_7] : memref<8x128xf32, #tpu.memory_space<vmem>>, vector<8x128xf32>
    %c0_8 = arith.constant 0 : index
    %c0_9 = arith.constant 0 : index
    %9 = vector.load %arg3[%c0_8, %c0_9] : memref<8x256xf32, #tpu.memory_space<vmem>>, vector<8x256xf32>
    %10 = arith.truncf %9 : vector<8x256xf32> to vector<8x256xbf16>
    %11 = arith.truncf %7 : vector<128x256xf32> to vector<128x256xbf16>
    %cst = arith.constant dense<0.000000e+00> : vector<8x128xf32>
    %12 = tpu.matmul %10, %11, %cst {dimension_numbers = #tpu.dot_dimension_numbers<[1], [1], [0], [0], [0, 0, 1, 0], [], []>} : vector<8x256xbf16>, vector<128x256xbf16>, vector<8x128xf32> -> vector<8x128xf32>
    %13 = arith.addf %8, %12 : vector<8x128xf32>
    %c0_10 = arith.constant 0 : index
    %c0_11 = arith.constant 0 : index
    %14 = vector.load %arg10[%c0_10, %c0_11] : memref<8x128xf32, #tpu.memory_space<vmem>>, vector<8x128xf32>
    tpu.vector_store %arg10[%c0_10, %c0_11], %13 {strides = array<i32>} : memref<8x128xf32, #tpu.memory_space<vmem>>, vector<8x128xf32>,
    %c0_i32_12 = arith.constant 0 : i32
    %15 = arith.cmpi eq, %arg2, %c0_i32_12 : i32
    %16 = arith.extui %15 : i1 to i32
    %c0_i32_13 = arith.constant 0 : i32
    %17 = arith.cmpi ne, %16, %c0_i32_13 : i32
    scf.if %17 {
      %c0_14 = arith.constant 0 : index
      %c0_15 = arith.constant 0 : index
      %18 = vector.load %arg7[%c0_14, %c0_15] : memref<1x128xf32, #tpu.memory_space<vmem>>, vector<1x128xf32>
      %c0_16 = arith.constant 0 : index
      %c0_17 = arith.constant 0 : index
      %19 = vector.load %arg8[%c0_16, %c0_17] : memref<1x128xf32, #tpu.memory_space<vmem>>, vector<1x128xf32>
      %c0_18 = arith.constant 0 : index
      %c0_19 = arith.constant 0 : index
      %20 = vector.load %arg9[%c0_18, %c0_19] : memref<1x128xf32, #tpu.memory_space<vmem>>, vector<1x128xf32>
      %21 = arith.mulf %19, %20 : vector<1x128xf32>
      %22 = arith.addf %18, %21 : vector<1x128xf32>
      %c0_20 = arith.constant 0 : index
      %c0_21 = arith.constant 0 : index
      %23 = vector.load %arg10[%c0_20, %c0_21] : memref<8x128xf32, #tpu.memory_space<vmem>>, vector<8x128xf32>
      %24 = vector.broadcast %22 : vector<1x128xf32> to vector<8x128xf32>
      %25 = arith.addf %23, %24 : vector<8x128xf32>
      %c0_22 = arith.constant 0 : index
      %c0_23 = arith.constant 0 : index
      %26 = vector.load %arg10[%c0_22, %c0_23] : memref<8x128xf32, #tpu.memory_space<vmem>>, vector<8x128xf32>
      tpu.vector_store %arg10[%c0_22, %c0_23], %25 {strides = array<i32>} : memref<8x128xf32, #tpu.memory_space<vmem>>, vector<8x128xf32>,
    } else {
    }
    return
  }
  func.func @transform_0(%arg0: i32, %arg1: i32, %arg2: i32) -> (i32, i32) {
    %c0_i32 = arith.constant 0 : i32
    return %arg1, %arg2 : i32, i32
  }
  func.func @transform_1(%arg0: i32, %arg1: i32, %arg2: i32) -> (i32, i32) {
    %c0_i32 = arith.constant 0 : i32
    return %arg0, %arg2 : i32, i32
  }
  func.func @transform_2(%arg0: i32, %arg1: i32, %arg2: i32) -> (i32, i32) {
    %c0_i32 = arith.constant 0 : i32
    return %arg0, %arg2 : i32, i32
  }
  func.func @transform_3(%arg0: i32, %arg1: i32, %arg2: i32) -> (i32, i32) {
    %c0_i32 = arith.constant 0 : i32
    return %arg0, %arg2 : i32, i32
  }
  func.func @transform_4(%arg0: i32, %arg1: i32, %arg2: i32) -> (i32, i32) {
    %c0_i32 = arith.constant 0 : i32
    %c0_i32_0 = arith.constant 0 : i32
    return %c0_i32, %arg0 : i32, i32
  }
  func.func @transform_5(%arg0: i32, %arg1: i32, %arg2: i32) -> (i32, i32) {
    %c0_i32 = arith.constant 0 : i32
    %c0_i32_0 = arith.constant 0 : i32
    return %c0_i32, %arg0 : i32, i32
  }
  func.func @transform_6(%arg0: i32, %arg1: i32, %arg2: i32) -> (i32, i32) {
    %c0_i32 = arith.constant 0 : i32
    %c0_i32_0 = arith.constant 0 : i32
    return %c0_i32, %arg0 : i32, i32
  }
  func.func @transform_7(%arg0: i32, %arg1: i32, %arg2: i32) -> (i32, i32) {
    %c0_i32 = arith.constant 0 : i32
    return %arg1, %arg0 : i32, i32
  }
}

</mosaic_0001>

<bundles_post_ra>
// kernel: tpu_custom_call.1
= control target key start
LH: loop header
LB: loop body
LE: loop exit
PB: predicated region body
PF: predicated region fallthrough
CT: control target
= control target key end

     0   :  { %12 = vsyncpa [#allocation3], 0  ;;  %s594_s0 = inlined_call_operand.hbm [shape: f32[8,256], index: 0, kind: input, shape index: {}]   ;;  %s595_s1 = inlined_call_operand.hbm [shape: f32[128,256], index: 1, kind: input, shape index: {}]   ;;  %s596_s2 = inlined_call_operand.hbm [shape: f32[128,256], index: 2, kind: input, shape index: {}]   ;;  %s597_s3 = inlined_call_operand.hbm [shape: f32[128,256], index: 3, kind: input, shape index: {}]   ;;  %s598_s4 = inlined_call_operand.vmem [shape: f32[1,128], index: 4, kind: input, shape index: {}]   ;;  %s599_s5 = inlined_call_operand.vmem [shape: f32[1,128], index: 5, kind: input, shape index: {}]   ;;  %s600_s6 = inlined_call_operand.vmem [shape: f32[1,128], index: 6, kind: input, shape index: {}]   ;;  %s601_s7 = inlined_call_operand.hbm [shape: f32[8,128], index: 7, kind: output, shape index: {}]  }
   0x1   :  { %13 = vsyncpa [#allocation6], 0 }
   0x2   :  { %14 = vsyncpa [#allocation9], 0 }
   0x3   :  { %15 = vsyncpa [#allocation4], 0  ;;  %s469_s24 = smov [#allocation5]   ;;  %s351_s28 = scalar_lea.hbm %s595_s1, 4096 }
   0x4   :  { %s31_s25 = sshll.u32 %s469_s24, 4  ;;  %p352_p0 = scmp.ne.s32.totalorder %s595_s1, %s351_s28  ;;  %s32_s25 = int_to_ptr.vmem [resolvable:$true] %s31_s25 }
   0x5   :  { %p355_p1 = scmp.lt.u32.totalorder %s351_s28, %s595_s1 }
   0x7   :  { %p357_p2 = pnand %p355_p1, %p352_p0 }
   0x9   :  { %360 = shalt.err (!%p357_p2)
}
   0xa   :  { %s361_s10 = scalar_lea.vmem %s32_s25, 4096  ;;  %p366_p4 = scmp.lt.s32.totalorder %s32_s25, %s32_s25 }
   0xb   :  { %p362_p3 = scmp.ne.s32.totalorder %s32_s25, %s361_s10  ;;  %p367_p5 = scmp.lt.s32.totalorder %s361_s10, %s361_s10 }
   0xd   :  { %p368_p6 = por %p367_p5, %p366_p4 }
   0xf   :  { %p369_p7 = pnand %p368_p6, %p362_p3 }
  0x11   :  { %372 = shalt.err (!%p369_p7)
}
  0x12   :  { %s470_s11 = smov 256   ;;  %s471_s12 = smov 16  }
  0x13   :  { %37 = dma.hbm_to_vmem [thread:$0]  %s595_s1, 4096, %s32_s25, [#allocation6], %s470_s11, %s470_s11, %s471_s12  }
  0x14   :  { %s472_s15 = smov [#allocation2]   ;;  %s473_s17 = smov [#allocation7]  }
  0x15   :  { %s22_s16 = sshll.u32 %s472_s15, 4  ;;  %s43_s18 = sshll.u32 %s473_s17, 4  ;;  %s23_s16 = int_to_ptr.vmem [resolvable:$true] %s22_s16  ;;  %s44_s18 = int_to_ptr.vmem [resolvable:$true] %s43_s18 }
  0x16   :  { %s373_s21 = scalar_lea.hbm %s594_s0, 256 }
  0x17   :  { %p374_p8 = scmp.ne.s32.totalorder %s594_s0, %s373_s21  ;;  %p377_p9 = scmp.lt.u32.totalorder %s373_s21, %s594_s0 }
  0x19   :  { %p379_p10 = pnand %p377_p9, %p374_p8 }
  0x1b   :  { %382 = shalt.err (!%p379_p10)
}
  0x1c   :  { %s383_s1 = scalar_lea.vmem %s23_s16, 256  ;;  %p388_p12 = scmp.lt.s32.totalorder %s23_s16, %s23_s16 }
  0x1d   :  { %p384_p11 = scmp.ne.s32.totalorder %s23_s16, %s383_s1  ;;  %p389_p13 = scmp.lt.s32.totalorder %s383_s1, %s383_s1 }
  0x1f   :  { %p390_p0 = por %p389_p13, %p388_p12 }
  0x21   :  { %p391_p1 = pnand %p390_p0, %p384_p11 }
  0x23   :  { %394 = shalt.err (!%p391_p1)
}
  0x24   :  { %25 = dma.hbm_to_vmem [thread:$0]  %s594_s0, 256, %s23_s16, [#allocation3]  }
  0x25   :  { %s395_s30 = scalar_lea.hbm %s596_s2, 4096 }
  0x26   :  { %p396_p2 = scmp.ne.s32.totalorder %s596_s2, %s395_s30  ;;  %p399_p3 = scmp.lt.u32.totalorder %s395_s30, %s596_s2 }
  0x28   :  { %p401_p4 = pnand %p399_p3, %p396_p2 }
  0x2a   :  { %404 = shalt.err (!%p401_p4)
}
  0x2b   :  { %s405_s14 = scalar_lea.vmem %s44_s18, 4096  ;;  %p410_p6 = scmp.lt.s32.totalorder %s44_s18, %s44_s18 }
  0x2c   :  { %p406_p5 = scmp.ne.s32.totalorder %s44_s18, %s405_s14  ;;  %p411_p7 = scmp.lt.s32.totalorder %s405_s14, %s405_s14 }
  0x2e   :  { %p412_p8 = por %p411_p7, %p410_p6 }
  0x30   :  { %p413_p9 = pnand %p412_p8, %p406_p5 }
  0x32   :  { %416 = shalt.err (!%p413_p9)
}
  0x33   :  { %49 = dma.hbm_to_vmem [thread:$0]  %s596_s2, 4096, %s44_s18, [#allocation6], %s470_s11, %s470_s11, %s471_s12  }
  0x34   :  { %s474_s16 = smov [#allocation8]   ;;  %s417_s21 = scalar_lea.hbm %s597_s3, 4096 }
  0x35   :  { %s55_s17 = sshll.u32 %s474_s16, 4  ;;  %p418_p10 = scmp.ne.s32.totalorder %s597_s3, %s417_s21  ;;  %s56_s17 = int_to_ptr.vmem [resolvable:$true] %s55_s17 }
  0x36   :  { %p421_p11 = scmp.lt.u32.totalorder %s417_s21, %s597_s3 }
  0x38   :  { %p423_p12 = pnand %p421_p11, %p418_p10 }
  0x3a   :  { %426 = shalt.err (!%p423_p12)
}
  0x3b   :  { %s427_s1 = scalar_lea.vmem %s56_s17, 4096  ;;  %p432_p0 = scmp.lt.s32.totalorder %s56_s17, %s56_s17 }
  0x3c   :  { %p428_p13 = scmp.ne.s32.totalorder %s56_s17, %s427_s1  ;;  %p433_p1 = scmp.lt.s32.totalorder %s427_s1, %s427_s1 }
  0x3e   :  { %p434_p2 = por %p433_p1, %p432_p0 }
  0x40   :  { %p435_p3 = pnand %p434_p2, %p428_p13 }
  0x42   :  { %438 = shalt.err (!%p435_p3)
}
  0x43   :  { %61 = dma.hbm_to_vmem [thread:$0]  %s597_s3, 4096, %s56_s17, [#allocation9], %s470_s11, %s470_s11, %s471_s12  }
  0x44   :  { %461 = dma.done.wait [#allocation3], 256  }
  0x45   :  { %462 = vsyncadd [#allocation3], 4294967040 }
  0x46   :  { %463 = dma.done.wait [#allocation6], 8192  }
  0x47   :  { %464 = vsyncadd [#allocation6], 4294959104 }
  0x48   :  { %465 = dma.done.wait [#allocation9], 4096  }
  0x49   :  { %466 = vsyncadd [#allocation9], 4294963200  ;;  %v87_v0 = vld [vmem:[#allocation5 + $0x8] sm:$0xff]  ;;  %v89_v1 = vld [vmem:[#allocation5 + $0x18] sm:$0xff]  ;;  %s475_s29 = smov [#allocation10]  }
  0x4a   :  { %v119_v2 = vld [vmem:[#allocation7 + $0x8] sm:$0xff]  ;;  %v121_v3 = vld [vmem:[#allocation7 + $0x18] sm:$0xff]  ;;  %v86_v8 = vld [vmem:[#allocation5] sm:$0xff]  ;;  %s332_s30 = sshll.u32 %s475_s29, 4  ;;  %s333_s30 = int_to_ptr.vmem [resolvable:$true] %s332_s30 }
  0x4b   :  { %v151_v4 = vld [vmem:[#allocation8 + $0x8] sm:$0xff]  ;;  %v153_v5 = vld [vmem:[#allocation8 + $0x18] sm:$0xff]  ;;  %v88_v9 = vld [vmem:[#allocation5 + $0x10] sm:$0xff]  ;;  %p444_p5 = scmp.lt.s32.totalorder %s333_s30, %s333_s30 }
  0x4c   :  { %v183_v6 = vmul.f32 %v151_v4, %v119_v2  ;;  %v185_v7 = vmul.f32 %v153_v5, %v121_v3  ;;  %v118_v10 = vld [vmem:[#allocation7] sm:$0xff]  ;;  %v120_v11 = vld [vmem:[#allocation7 + $0x10] sm:$0xff]  ;;  %v91_v18 = vld [vmem:[#allocation5 + $0x28] sm:$0xff] }
  0x4d   :  { %v150_v12 = vld [vmem:[#allocation8] sm:$0xff]  ;;  %v152_v13 = vld [vmem:[#allocation8 + $0x10] sm:$0xff]  ;;  %v93_v19 = vld [vmem:[#allocation5 + $0x38] sm:$0xff] }
  0x4e   :  { %v215_v14 = vadd.f32 %v183_v6, %v87_v0  ;;  %v217_v15 = vadd.f32 %v185_v7, %v89_v1  ;;  %v182_v16 = vmul.f32 %v150_v12, %v118_v10  ;;  %v184_v17 = vmul.f32 %v152_v13, %v120_v11  ;;  %v123_v20 = vld [vmem:[#allocation7 + $0x28] sm:$0xff]  ;;  %v125_v21 = vld [vmem:[#allocation7 + $0x38] sm:$0xff]  ;;  %v90_v28 = vld [vmem:[#allocation5 + $0x20] sm:$0xff] }
  0x4f   :  { %v155_v22 = vld [vmem:[#allocation8 + $0x28] sm:$0xff]  ;;  %v157_v23 = vld [vmem:[#allocation8 + $0x38] sm:$0xff]  ;;  %v92_v29 = vld [vmem:[#allocation5 + $0x30] sm:$0xff] }
  0x50   :  { %v252_v24 = vpack.c.bf16 %v217_v15, %v215_v14  ;;  %v214_v25 = vadd.f32 %v182_v16, %v86_v8  ;;  %v216_v26 = vadd.f32 %v184_v17, %v88_v9  ;;  %v187_v27 = vmul.f32 %v155_v22, %v123_v20  ;;  %v122_v30 = vld [vmem:[#allocation7 + $0x20] sm:$0xff]  ;;  %v124_v32 = vld [vmem:[#allocation7 + $0x30] sm:$0xff]  ;;  %v95_v39 = vld [vmem:[#allocation5 + $0x48] sm:$0xff] }
  0x51   :  { %v189_v31 = vmul.f32 %v157_v23, %v125_v21  ;;  %v154_v33 = vld [vmem:[#allocation8 + $0x20] sm:$0xff]  ;;  %v156_v34 = vld [vmem:[#allocation8 + $0x30] sm:$0xff]  ;;  %v97_v40 = vld [vmem:[#allocation5 + $0x58] sm:$0xff] }
  0x52   :  { %267 = vmatprep.subr.bf16.mxu0 %v252_v24  ;;  %v251_v35 = vpack.c.bf16 %v216_v26, %v214_v25  ;;  %v219_v36 = vadd.f32 %v187_v27, %v91_v18  ;;  %v186_v37 = vmul.f32 %v154_v33, %v122_v30  ;;  %v188_v38 = vmul.f32 %v156_v34, %v124_v32  ;;  %v127_v41 = vld [vmem:[#allocation7 + $0x48] sm:$0xff]  ;;  %v129_v43 = vld [vmem:[#allocation7 + $0x58] sm:$0xff]  ;;  %v126_v50 = vld [vmem:[#allocation7 + $0x40] sm:$0xff] }
  0x53   :  { %v221_v42 = vadd.f32 %v189_v31, %v93_v19  ;;  %v159_v44 = vld [vmem:[#allocation8 + $0x48] sm:$0xff]  ;;  %v161_v45 = vld [vmem:[#allocation8 + $0x58] sm:$0xff]  ;;  %v128_v52 = vld [vmem:[#allocation7 + $0x50] sm:$0xff] }
  0x54   :  { %268 = vmatpush1.bf16.xpose.msra.mxu0 %v251_v35  ;;  %v218_v46 = vadd.f32 %v186_v37, %v90_v28  ;;  %v220_v47 = vadd.f32 %v188_v38, %v92_v29  ;;  %v191_v48 = vmul.f32 %v159_v44, %v127_v41  ;;  %v193_v49 = vmul.f32 %v161_v45, %v129_v43  ;;  %v158_v53 = vld [vmem:[#allocation8 + $0x40] sm:$0xff]  ;;  %v160_v54 = vld [vmem:[#allocation8 + $0x50] sm:$0xff]  ;;  %v131_v57 = vld [vmem:[#allocation7 + $0x68] sm:$0xff] }
  0x55   :  { %v254_v51 = vpack.c.bf16 %v221_v42, %v219_v36  ;;  %v133_v58 = vld [vmem:[#allocation7 + $0x78] sm:$0xff]  ;;  %v163_v59 = vld [vmem:[#allocation8 + $0x68] sm:$0xff]  ;;  %v190_v62 = vmul.f32 %v158_v53, %v126_v50  ;;  %v192_v63 = vmul.f32 %v160_v54, %v128_v52  ;;  %v94_v1 = vld [vmem:[#allocation5 + $0x40] sm:$0xff] }
  0x56   :  { %v223_v55 = vadd.f32 %v191_v48, %v95_v39  ;;  %v225_v56 = vadd.f32 %v193_v49, %v97_v40  ;;  %v165_v60 = vld [vmem:[#allocation8 + $0x78] sm:$0xff]  ;;  %v253_v61 = vpack.c.bf16 %v220_v47, %v218_v46  ;;  %v96_v2 = vld [vmem:[#allocation5 + $0x50] sm:$0xff]  ;;  %v195_v3 = vmul.f32 %v163_v59, %v131_v57  ;;  %v99_v5 = vld [vmem:[#allocation5 + $0x68] sm:$0xff] }
  0x57   :  { %269 = vmatprep.subr.bf16.mxu0 %v254_v51  ;;  %v197_v4 = vmul.f32 %v165_v60, %v133_v58  ;;  %v101_v6 = vld [vmem:[#allocation5 + $0x78] sm:$0xff]  ;;  %v222_v7 = vadd.f32 %v190_v62, %v94_v1  ;;  %v224_v8 = vadd.f32 %v192_v63, %v96_v2  ;;  %v130_v9 = vld [vmem:[#allocation7 + $0x60] sm:$0xff]  ;;  %v132_v10 = vld [vmem:[#allocation7 + $0x70] sm:$0xff] }
  0x58   :  { %v256_v0 = vpack.c.bf16 %v225_v56, %v223_v55  ;;  %v227_v11 = vadd.f32 %v195_v3, %v99_v5  ;;  %v162_v13 = vld [vmem:[#allocation8 + $0x60] sm:$0xff]  ;;  %v164_v14 = vld [vmem:[#allocation8 + $0x70] sm:$0xff]  ;;  %v135_v15 = vld [vmem:[#allocation7 + $0x88] sm:$0xff] }
  0x59   :  { %v229_v12 = vadd.f32 %v197_v4, %v101_v6  ;;  %v137_v16 = vld [vmem:[#allocation7 + $0x98] sm:$0xff]  ;;  %v167_v17 = vld [vmem:[#allocation8 + $0x88] sm:$0xff]  ;;  %v255_v19 = vpack.c.bf16 %v224_v8, %v222_v7  ;;  %v194_v20 = vmul.f32 %v162_v13, %v130_v9  ;;  %v196_v21 = vmul.f32 %v164_v14, %v132_v10  ;;  %v98_v23 = vld [vmem:[#allocation5 + $0x60] sm:$0xff] }
  0x5a   :  { %v169_v18 = vld [vmem:[#allocation8 + $0x98] sm:$0xff]  ;;  %v100_v24 = vld [vmem:[#allocation5 + $0x70] sm:$0xff]  ;;  %v199_v25 = vmul.f32 %v167_v17, %v135_v15  ;;  %v103_v27 = vld [vmem:[#allocation5 + $0x88] sm:$0xff] }
  0x5b   :  { %v258_v22 = vpack.c.bf16 %v229_v12, %v227_v11  ;;  %v201_v26 = vmul.f32 %v169_v18, %v137_v16  ;;  %v105_v28 = vld [vmem:[#allocation5 + $0x98] sm:$0xff]  ;;  %v226_v29 = vadd.f32 %v194_v20, %v98_v23  ;;  %v228_v30 = vadd.f32 %v196_v21, %v100_v24  ;;  %v134_v31 = vld [vmem:[#allocation7 + $0x80] sm:$0xff]  ;;  %v136_v32 = vld [vmem:[#allocation7 + $0x90] sm:$0xff] }
  0x5c   :  { %270 = vmatpush1.bf16.xpose.msra.mxu0 %v253_v61  ;;  %v231_v33 = vadd.f32 %v199_v25, %v103_v27  ;;  %v166_v35 = vld [vmem:[#allocation8 + $0x80] sm:$0xff]  ;;  %v168_v36 = vld [vmem:[#allocation8 + $0x90] sm:$0xff]  ;;  %v139_v37 = vld [vmem:[#allocation7 + $0xa8] sm:$0xff] }
  0x5d   :  { %271 = vmatprep.subr.bf16.mxu0 %v256_v0  ;;  %v233_v34 = vadd.f32 %v201_v26, %v105_v28  ;;  %v141_v38 = vld [vmem:[#allocation7 + $0xb8] sm:$0xff]  ;;  %v171_v39 = vld [vmem:[#allocation8 + $0xa8] sm:$0xff]  ;;  %v257_v41 = vpack.c.bf16 %v228_v30, %v226_v29  ;;  %v198_v42 = vmul.f32 %v166_v35, %v134_v31  ;;  %v200_v43 = vmul.f32 %v168_v36, %v136_v32  ;;  %v102_v45 = vld [vmem:[#allocation5 + $0x80] sm:$0xff] }
  0x5e   :  { %v173_v40 = vld [vmem:[#allocation8 + $0xb8] sm:$0xff]  ;;  %v104_v46 = vld [vmem:[#allocation5 + $0x90] sm:$0xff]  ;;  %v203_v47 = vmul.f32 %v171_v39, %v139_v37  ;;  %v107_v49 = vld [vmem:[#allocation5 + $0xa8] sm:$0xff] }
  0x5f   :  { %v260_v44 = vpack.c.bf16 %v233_v34, %v231_v33  ;;  %v205_v48 = vmul.f32 %v173_v40, %v141_v38  ;;  %v109_v50 = vld [vmem:[#allocation5 + $0xb8] sm:$0xff]  ;;  %v230_v53 = vadd.f32 %v198_v42, %v102_v45  ;;  %v232_v54 = vadd.f32 %v200_v43, %v104_v46  ;;  %v138_v55 = vld [vmem:[#allocation7 + $0xa0] sm:$0xff]  ;;  %v140_v56 = vld [vmem:[#allocation7 + $0xb0] sm:$0xff] }
  0x60   :  { %v248_v51 = vld [vmem:[#allocation2 + $0x8] sm:$0xff]  ;;  %v235_v57 = vadd.f32 %v203_v47, %v107_v49  ;;  %v170_v59 = vld [vmem:[#allocation8 + $0xa0] sm:$0xff]  ;;  %v172_v60 = vld [vmem:[#allocation8 + $0xb0] sm:$0xff] }
  0x61   :  { %v250_v52 = vpack.c.bf16 %v248_v51, %v248_v51  ;;  %v237_v58 = vadd.f32 %v205_v48, %v109_v50  ;;  %v143_v61 = vld [vmem:[#allocation7 + $0xc8] sm:$0xff]  ;;  %v145_v62 = vld [vmem:[#allocation7 + $0xd8] sm:$0xff]  ;;  %v259_v1 = vpack.c.bf16 %v232_v54, %v230_v53  ;;  %v202_v2 = vmul.f32 %v170_v59, %v138_v55  ;;  %v106_v5 = vld [vmem:[#allocation5 + $0xa0] sm:$0xff] }
  0x62   :  { %v175_v63 = vld [vmem:[#allocation8 + $0xc8] sm:$0xff]  ;;  %v177_v0 = vld [vmem:[#allocation8 + $0xd8] sm:$0xff]  ;;  %v204_v3 = vmul.f32 %v172_v60, %v140_v56  ;;  %v108_v6 = vld [vmem:[#allocation5 + $0xb0] sm:$0xff] }
  0x63   :  { %299 = vmatprep.mubr.bf16.mxu0 %v250_v52  ;;  %v262_v4 = vpack.c.bf16 %v237_v58, %v235_v57  ;;  %v207_v7 = vmul.f32 %v175_v63, %v143_v61  ;;  %v209_v8 = vmul.f32 %v177_v0, %v145_v62  ;;  %v111_v9 = vld [vmem:[#allocation5 + $0xc8] sm:$0xff]  ;;  %v113_v10 = vld [vmem:[#allocation5 + $0xd8] sm:$0xff]  ;;  %v234_v11 = vadd.f32 %v202_v2, %v106_v5  ;;  %v142_v13 = vld [vmem:[#allocation7 + $0xc0] sm:$0xff] }
  0x64   :  { %272 = vmatpush1.bf16.xpose.msra.mxu0 %v255_v19  ;;  %v236_v12 = vadd.f32 %v204_v3, %v108_v6  ;;  %v144_v14 = vld [vmem:[#allocation7 + $0xd0] sm:$0xff]  ;;  %v174_v17 = vld [vmem:[#allocation8 + $0xc0] sm:$0xff]  ;;  %v147_v19 = vld [vmem:[#allocation7 + $0xe8] sm:$0xff]  ;;  %v319_v52 = vlaneseq }
  0x65   :  { %273 = vmatprep.subr.bf16.mxu0 %v258_v22  ;;  %v239_v15 = vadd.f32 %v207_v7, %v111_v9  ;;  %v241_v16 = vadd.f32 %v209_v8, %v113_v10  ;;  %v176_v18 = vld [vmem:[#allocation8 + $0xd0] sm:$0xff]  ;;  %v149_v20 = vld [vmem:[#allocation7 + $0xf8] sm:$0xff]  ;;  %v179_v21 = vld [vmem:[#allocation8 + $0xe8] sm:$0xff]  ;;  %v206_v24 = vmul.f32 %v174_v17, %v142_v13 }
  0x66   :  { %v181_v22 = vld [vmem:[#allocation8 + $0xf8] sm:$0xff]  ;;  %v261_v23 = vpack.c.bf16 %v236_v12, %v234_v11  ;;  %v208_v25 = vmul.f32 %v176_v18, %v144_v14  ;;  %v110_v27 = vld [vmem:[#allocation5 + $0xc0] sm:$0xff]  ;;  %v112_v28 = vld [vmem:[#allocation5 + $0xd0] sm:$0xff]  ;;  %v211_v29 = vmul.f32 %v179_v21, %v147_v19  ;;  %v320_v56 = vshrl.u32 %v319_v52, 7 }
  0x67   :  { %v264_v26 = vpack.c.bf16 %v241_v16, %v239_v15  ;;  %v213_v30 = vmul.f32 %v181_v22, %v149_v20  ;;  %v115_v31 = vld [vmem:[#allocation5 + $0xe8] sm:$0xff]  ;;  %v117_v32 = vld [vmem:[#allocation5 + $0xf8] sm:$0xff]  ;;  %v238_v33 = vadd.f32 %v206_v24, %v110_v27  ;;  %v146_v35 = vld [vmem:[#allocation7 + $0xe0] sm:$0xff] }
  0x68   :  { %v240_v34 = vadd.f32 %v208_v25, %v112_v28  ;;  %v243_v36 = vadd.f32 %v211_v29, %v115_v31  ;;  %v148_v38 = vld [vmem:[#allocation7 + $0xf0] sm:$0xff]  ;;  %v178_v39 = vld [vmem:[#allocation8 + $0xe0] sm:$0xff]  ;;  %v321_v59 = vsub.s32 0, %v320_v56 }
  0x69   :  { %v245_v37 = vadd.f32 %v213_v30, %v117_v32  ;;  %v180_v40 = vld [vmem:[#allocation8 + $0xf0] sm:$0xff]  ;;  %v210_v42 = vmul.f32 %v178_v39, %v146_v35  ;;  %v114_v45 = vld [vmem:[#allocation5 + $0xe0] sm:$0xff] }
  0x6a   :  { %v212_v43 = vmul.f32 %v180_v40, %v148_v38  ;;  %v116_v46 = vld [vmem:[#allocation5 + $0xf0] sm:$0xff] }
  0x6b   :  { %v242_v47 = vadd.f32 %v210_v42, %v114_v45  ;;  %v247_v50 = vld [vmem:[#allocation2] sm:$0xff] }
  0x6c   :  { %274 = vmatpush1.bf16.xpose.msra.mxu0 %v257_v41  ;;  %v263_v41 = vpack.c.bf16 %v240_v34, %v238_v33  ;;  %v244_v48 = vadd.f32 %v212_v43, %v116_v46  ;;  %v249_v51 = vpack.c.bf16 %v247_v50, %v247_v50  ;;  %v313_v53 = vld [vmem:[%s599_s5] sm:$0x1]  ;;  %s439_s5 = scalar_lea.vmem %s333_s30, 128 }
  0x6d   :  { %275 = vmatprep.subr.bf16.mxu0 %v260_v44  ;;  %v266_v44 = vpack.c.bf16 %v245_v37, %v243_v36  ;;  %v314_v54 = vld [vmem:[%s600_s6] sm:$0x1]  ;;  %p440_p4 = scmp.ne.s32.totalorder %s333_s30, %s439_s5  ;;  %p445_p6 = scmp.lt.s32.totalorder %s439_s5, %s439_s5 }
  0x6e   :  { %v265_v49 = vpack.c.bf16 %v244_v48, %v242_v47  ;;  %v315_v55 = vmul.f32 %v314_v54, %v313_v53  ;;  %v312_v57 = vld [vmem:[%s598_s4] sm:$0x1] }
  0x6f   :  { %p446_p7 = por %p445_p6, %p444_p5 }
  0x70   :  { %v316_v58 = vadd.f32 %v315_v55, %v312_v57 }
  0x71   :  { %p447_p8 = pnand %p446_p7, %p440_p4 }
  0x72   :  { %v322_v60 = vrot.slane %v316_v58, %v321_v59 }
  0x74   :  { %276 = vmatpush1.bf16.xpose.msra.mxu0 %v259_v1 }
  0x75   :  { %277 = vmatprep.subr.bf16.mxu0 %v262_v4 }
  0x7c   :  { %278 = vmatpush1.bf16.xpose.msra.mxu0 %v261_v23 }
  0x7d   :  { %279 = vmatprep.subr.bf16.mxu0 %v264_v26 }
  0x84   :  { %280 = vmatpush1.bf16.xpose.msra.mxu0 %v263_v41 }
  0x85   :  { %281 = vmatprep.subr.bf16.mxu0 %v266_v44 }
  0x8c   :  { %282 = vmatpush1.bf16.xpose.msra.mxu0 %v265_v49 }
  0x93   :  { %300 = vmatmul.mubr.bf16.vlgmr.msra.gmra.mrb[0].mxu0 %v249_v51 }
 0x166   :  { %v301_v61 = vpop.f32.mrb[0].mxu0 }
 0x167   :  { %v303_v62 = vpop.f32.mrb[1].mxu0  ;;  %v324_v1 = vadd.f32 %v322_v60, %v301_v61 }
 0x168   :  { %v304_v63 = vpop.f32.mrb[2].mxu0 }
 0x169   :  { %v305_v0 = vpop.f32.mrb[3].mxu0  ;;  %325 = vst [vmem:[#allocation10] sm:$0xff] %v324_v1 }
 0x16a   :  { %450 = shalt.err (!%p447_p8)
}
 0x16b   :  { %s451_s8 = scalar_lea.hbm %s601_s7, 128 }
 0x16c   :  { %p452_p9 = scmp.ne.s32.totalorder %s601_s7, %s451_s8  ;;  %p455_p10 = scmp.lt.u32.totalorder %s451_s8, %s601_s7 }
 0x16e   :  { %p457_p11 = pnand %p455_p10, %p452_p9 }
 0x170   :  { %460 = shalt.err (!%p457_p11)
}
 0x171   :  { %335 = dma.vmem_to_hbm [thread:$0]  %s333_s30, 128, %s601_s7, [#allocation4]  }
 0x172   :  { %467 = dma.done.wait [#allocation4], 128  }
 0x173   :  { %468 = vsyncadd [#allocation4], 4294967168 }
 0x174   :  { %339 = vsyncpa [#allocation3], 1 }
 0x175   :  { %340 = vsyncpa [#allocation6], 1 }
 0x176   :  { %341 = vsyncpa [#allocation9], 1 }
 0x177   :  { %342 = vsyncpa [#allocation4], 1 }

</bundles_post_ra>
